<compile_context>
chip_gen: v6e
topology: v6e:2x2x1
jax: 0.10.0
libtpu: 0.0.40
codegen_flags: <defaults>
</compile_context>

<pallas_src>
import functools

import jax
import jax.numpy as jnp
from jax import lax
from jax.experimental import pallas as pl
from jax.experimental.pallas import tpu as pltpu


def _pick_tile(dim, pref, align):
    """Largest divisor of `dim` that is <= `pref` and a multiple of `align`.

    Falls back to the full extent (always a legal block shape) when no
    aligned divisor exists.
    """
    for t in range(min(pref, dim), 0, -1):
        if dim % t == 0 and t % align == 0:
            return t
    return dim


# ---------------------------------------------------------------------------
# Fused kernel: flash-style attention over Lk tiles + fc_out in the finalize.
# Grid: (N, Lq // tq, Lk // tk)  — last axis is the online-softmax reduction.
# ---------------------------------------------------------------------------
def _attn_fc_kernel(q_ref, k_ref, v_ref, mask_ref, wt_ref, b_ref, o_ref,
                    m_ref, l_ref, acc_ref, *, heads, head_dim, scale):
    # blocks : q (1, tq, E) | k/v (1, tk, E) | mask (1, tq, tk) i8
    #          wt (E, E) resident | b (1, E) resident | out (1, tq, E)
    # scratch: m/l (heads, tq, 1) f32 | acc (heads, tq, D) f32
    j = pl.program_id(2)

    @pl.when(j == 0)
    def _init():
        m_ref[...] = jnp.full_like(m_ref, -jnp.inf)
        l_ref[...] = jnp.zeros_like(l_ref)
        acc_ref[...] = jnp.zeros_like(acc_ref)

    # Scale folded into q (much cheaper than scaling the (tq, tk) energy per
    # head); operands stay in their native dtype for the MXU, f32 accumulate.
    q = q_ref[0] * scale                               # (tq, E)
    k = k_ref[0]                                       # (tk, E)
    v = v_ref[0]                                       # (tk, E)
    # int8 mask -> i32 before comparing so the predicate shares the f32 layout.
    masked = mask_ref[0].astype(jnp.int32) == 0        # (tq, tk) bool
    neg_big = jnp.float32(-1e20)

    for h in range(heads):                             # static, unrolled
        lo = h * head_dim
        hi = lo + head_dim
        qh = q[:, lo:hi]                               # (tq, D)
        kh = k[:, lo:hi]                               # (tk, D)
        vh = v[:, lo:hi]                               # (tk, D)

        # energy = einsum('qd,kd->qk'): contract last dims, no K transpose.
        s = lax.dot_general(qh, kh, (((1,), (1,)), ((), ())),
                            preferred_element_type=jnp.float32)   # (tq, tk)
        s = jnp.where(masked, neg_big, s)              # masked_fill, as torch

        # Online softmax — all stats kept in f32 (safe on v5e too).
        # TODO(synk): bf16 exp on v6e/v7x if the EUP becomes the binding slot.
        m_prev = m_ref[h]                                          # (tq, 1)
        m_new = jnp.maximum(m_prev, jnp.max(s, axis=-1, keepdims=True))
        alpha = jnp.exp(m_prev - m_new)                            # (tq, 1)
        p = jnp.exp(s - m_new)                                     # (tq, tk)

        l_ref[h] = alpha * l_ref[h] + jnp.sum(p, axis=-1, keepdims=True)
        m_ref[h] = m_new
        acc_ref[h] = alpha * acc_ref[h] + jnp.dot(
            p.astype(vh.dtype), vh, preferred_element_type=jnp.float32)

    @pl.when(j == pl.num_programs(2) - 1)
    def _finalize():
        # Normalize each head and project through fc_out without ever forming
        # an (N, Lq, E) intermediate in HBM:
        #   out = sum_h attn_h @ W^T[h*D:(h+1)*D, :] + b
        tq = acc_ref.shape[1]
        e_out = wt_ref.shape[1]
        out = jnp.zeros((tq, e_out), jnp.float32)
        for h in range(heads):
            lo = h * head_dim
            hi = lo + head_dim
            inv = pl.reciprocal(l_ref[h], approx=True)             # (tq, 1)
            attn_h = acc_ref[h] * inv                              # (tq, D)
            wt_h = wt_ref[lo:hi, :]                                # (D, E)
            out = out + jnp.dot(attn_h.astype(wt_h.dtype), wt_h,
                                preferred_element_type=jnp.float32)
        # Single lane-dense store of the projected (tq, E) tile.
        o_ref[0] = (out + b_ref[...]).astype(o_ref.dtype)


def _attention_fc(q, k, v, mask_i8, wt, b2d, embed_size, heads, head_dim):
    # q: (N, Lq, E), k/v: (N, Lk, E), mask_i8: (N, Lq, Lk) int8 (head-invariant)
    # wt: (E, E) = fc_out weight transposed once at init; b2d: (1, E)
    N, Lq, E = q.shape
    Lk = k.shape[1]
    scale = 1.0 / (embed_size ** 0.5)

    # tq sublane-aligned (x8); tk lane-aligned (x128, it is the minor dim of
    # the mask / energy tiles).  These sizes keep K/V double-buffers plus the
    # (tq, tk) f32 energy well under v7x's 64 MiB VMEM even at large E.
    tq = _pick_tile(Lq, 256, 8)
    tk = _pick_tile(Lk, 512, 128)
    grid = (N, Lq // tq, Lk // tk)

    kernel = functools.partial(_attn_fc_kernel, heads=heads,
                               head_dim=head_dim, scale=scale)
    return pl.pallas_call(
        kernel,
        out_shape=jax.ShapeDtypeStruct((N, Lq, E), q.dtype),
        grid_spec=pltpu.PrefetchScalarGridSpec(
            num_scalar_prefetch=0,
            grid=grid,
            in_specs=[
                pl.BlockSpec((1, tq, E), lambda n, i, j: (n, i, 0)),   # q
                pl.BlockSpec((1, tk, E), lambda n, i, j: (n, j, 0)),   # k
                pl.BlockSpec((1, tk, E), lambda n, i, j: (n, j, 0)),   # v
                pl.BlockSpec((1, tq, tk), lambda n, i, j: (n, i, j)),  # mask
                pl.BlockSpec((E, E), lambda n, i, j: (0, 0)),          # W^T
                pl.BlockSpec((1, E), lambda n, i, j: (0, 0)),          # bias
            ],
            out_specs=pl.BlockSpec((1, tq, E), lambda n, i, j: (n, i, 0)),
            scratch_shapes=[
                pltpu.VMEM((heads, tq, 1), jnp.float32),         # running max
                pltpu.VMEM((heads, tq, 1), jnp.float32),         # running sum
                pltpu.VMEM((heads, tq, head_dim), jnp.float32),  # P @ V acc
            ],
        ),
        compiler_params=pltpu.CompilerParams(
            dimension_semantics=("parallel", "parallel", "arbitrary"),
            vmem_limit_bytes=64 * 1024 * 1024),
    )(q, k, v, mask_i8, wt, b2d)


# ---------------------------------------------------------------------------
# Module wrapper
# ---------------------------------------------------------------------------
class SelfAttentionPallas:
    def __init__(self, embed_size, heads, key):
        assert embed_size % heads == 0, "embed size needs to be div by heads"
        self.embed_size = embed_size
        self.heads = heads
        self.head_dim = embed_size // heads
        k_w, k_b = jax.random.split(key)
        bound = 1.0 / (embed_size ** 0.5)
        # fc_out parameters in PyTorch layout (out_features, in_features) …
        self.fc_w = jax.random.uniform(
            k_w, (embed_size, embed_size), jnp.float32, -bound, bound)
        # … with the transpose hoisted to init (paid once, not per call).
        self.fc_wt = self.fc_w.T
        self.fc_b = jax.random.uniform(
            k_b, (embed_size,), jnp.float32, -bound, bound)
        self.fc_b2d = self.fc_b.reshape(1, embed_size)
        # TODO(synk): self.values / self.keys / self.queries Linears exist in
        # the PyTorch module but are never used in its forward(); omitted.

    def __call__(self, values, keys, query, mask):
        N, Lq, E = query.shape
        Lk = keys.shape[1]
        # Head-invariant mask as (N, Lq, Lk) int8 — no H-fold HBM broadcast
        # and 4x less mask DMA than int32.
        # TODO(synk): per-head masks would need an (N, H, Lq, Lk) path.
        mask = jnp.asarray(mask)
        if mask.ndim == 4:
            mask_b = jnp.broadcast_to(mask[:, :1], (N, 1, Lq, Lk))[:, 0]
        else:
            mask_b = jnp.broadcast_to(mask, (N, Lq, Lk))
        mask_b = mask_b.astype(jnp.int8)
        return _attention_fc(query, keys, values, mask_b,
                             self.fc_wt, self.fc_b2d,
                             self.embed_size, self.heads, self.head_dim)


# ---------------------------------------------------------------------------
# Pure-JAX reference (mirrors the PyTorch forward) for a correctness check.
# ---------------------------------------------------------------------------
def _reference(values, keys, query, mask, w, b, embed_size, heads):
    N, Lq, E = query.shape
    Lk = keys.shape[1]
    D = E // heads
    v = values.reshape(N, Lk, heads, D)
    k = keys.reshape(N, Lk, heads, D)
    q = query.reshape(N, Lq, heads, D)
    energy = jnp.einsum("nqhd,nkhd->nhqk", q, k)
    energy = jnp.where(mask == 0, jnp.float32(-1e20), energy)
    attn = jax.nn.softmax(energy / (embed_size ** 0.5), axis=3)
    out = jnp.einsum("nhqk,nkhd->nqhd", attn, v).reshape(N, Lq, E)
    return out @ w.T + b


# ---------------------------------------------------------------------------
if __name__ == "__main__":
    N, SEQ, EMBED, HEADS = 2, 8, 32, 4

    root = jax.random.PRNGKey(0)
    k_mod, k_v, k_k, k_q = jax.random.split(root, 4)

    module = SelfAttentionPallas(EMBED, HEADS, k_mod)

    values = jax.random.normal(k_v, (N, SEQ, EMBED), jnp.float32)
    keys = jax.random.normal(k_k, (N, SEQ, EMBED), jnp.float32)
    query = jax.random.normal(k_q, (N, SEQ, EMBED), jnp.float32)
    # causal-style mask, shape (N, 1, Lq, Lk), 1 = keep, 0 = masked
    mask = jnp.tril(jnp.ones((SEQ, SEQ), jnp.int32))[None, None, :, :]
    mask = jnp.broadcast_to(mask, (N, 1, SEQ, SEQ))

    out = module(values, keys, query, mask)
    jax.block_until_ready(out)
    assert out.shape == (N, SEQ, EMBED)

    ref = _reference(values, keys, query, mask,
                     module.fc_w, module.fc_b, EMBED, HEADS)
    # approx reciprocal + scale-folded-into-q -> close but not bit-identical.
    assert jnp.allclose(out, ref, rtol=5e-3, atol=5e-3), "mismatch vs reference"

    print("KERNEL_OK")
</pallas_src>

<mosaic_0001>
module attributes {stable_mosaic.version = 11 : i64} {
  func.func @_attn_fc_kernel(%arg0: i32, %arg1: i32, %arg2: i32, %arg3: memref<1x8x32xf32, #tpu.memory_space<vmem>>, %arg4: memref<1x8x32xf32, #tpu.memory_space<vmem>>, %arg5: memref<1x8x32xf32, #tpu.memory_space<vmem>>, %arg6: memref<1x8x8xi8, #tpu.memory_space<vmem>>, %arg7: memref<32x32xf32, #tpu.memory_space<vmem>>, %arg8: memref<1x32xf32, #tpu.memory_space<vmem>>, %arg9: memref<1x8x32xf32, #tpu.memory_space<vmem>>, %arg10: memref<4x8x1xf32, #tpu.memory_space<vmem>>, %arg11: memref<4x8x1xf32, #tpu.memory_space<vmem>>, %arg12: memref<4x8x8xf32, #tpu.memory_space<vmem>>) attributes {dimension_semantics = [#tpu.dimension_semantics<parallel>, #tpu.dimension_semantics<parallel>, #tpu.dimension_semantics<arbitrary>], iteration_bounds = array<i64: 2, 1, 1>, scalar_prefetch = 0 : i64, scratch_operands = 3 : i64, tpu.core_type = #tpu.core_type<tc>, window_params = [{transform_indices = @transform_0, window_bounds = array<i64: 1, 8, 32>}, {transform_indices = @transform_1, window_bounds = array<i64: 1, 8, 32>}, {transform_indices = @transform_2, window_bounds = array<i64: 1, 8, 32>}, {transform_indices = @transform_3, window_bounds = array<i64: 1, 8, 8>}, {pipeline_mode = #tpu.pipeline_mode<synchronous>, transform_indices = @transform_4, window_bounds = array<i64: 32, 32>}, {pipeline_mode = #tpu.pipeline_mode<synchronous>, transform_indices = @transform_5, window_bounds = array<i64: 1, 32>}, {transform_indices = @transform_6, window_bounds = array<i64: 1, 8, 32>}]} {
    %c0_i32 = arith.constant 0 : i32
    %0 = arith.cmpi eq, %arg2, %c0_i32 : i32
    %1 = arith.extui %0 : i1 to i32
    %c0_i32_0 = arith.constant 0 : i32
    %2 = arith.cmpi ne, %1, %c0_i32_0 : i32
    scf.if %2 {
      %cst_104 = arith.constant 0xFF800000 : f32
      %167 = vector.broadcast %cst_104 : f32 to vector<4x8x1xf32>
      %c0_105 = arith.constant 0 : index
      %c0_106 = arith.constant 0 : index
      %c0_107 = arith.constant 0 : index
      %168 = vector.load %arg10[%c0_105, %c0_106, %c0_107] : memref<4x8x1xf32, #tpu.memory_space<vmem>>, vector<4x8x1xf32>
      tpu.vector_store %arg10[%c0_105, %c0_106, %c0_107], %167 {strides = array<i32>} : memref<4x8x1xf32, #tpu.memory_space<vmem>>, vector<4x8x1xf32>,
      %cst_108 = arith.constant 0.000000e+00 : f32
      %169 = vector.broadcast %cst_108 : f32 to vector<4x8x1xf32>
      %c0_109 = arith.constant 0 : index
      %c0_110 = arith.constant 0 : index
      %c0_111 = arith.constant 0 : index
      %170 = vector.load %arg11[%c0_109, %c0_110, %c0_111] : memref<4x8x1xf32, #tpu.memory_space<vmem>>, vector<4x8x1xf32>
      tpu.vector_store %arg11[%c0_109, %c0_110, %c0_111], %169 {strides = array<i32>} : memref<4x8x1xf32, #tpu.memory_space<vmem>>, vector<4x8x1xf32>,
      %cst_112 = arith.constant 0.000000e+00 : f32
      %171 = vector.broadcast %cst_112 : f32 to vector<4x8x8xf32>
      %c0_113 = arith.constant 0 : index
      %c0_114 = arith.constant 0 : index
      %c0_115 = arith.constant 0 : index
      %172 = vector.load %arg12[%c0_113, %c0_114, %c0_115] : memref<4x8x8xf32, #tpu.memory_space<vmem>>, vector<4x8x8xf32>
      tpu.vector_store %arg12[%c0_113, %c0_114, %c0_115], %171 {strides = array<i32>} : memref<4x8x8xf32, #tpu.memory_space<vmem>>, vector<4x8x8xf32>,
    } else {
    }
    %c0 = arith.constant 0 : index
    %c0_1 = arith.constant 0 : index
    %c0_2 = arith.constant 0 : index
    %3 = vector.load %arg3[%c0, %c0_1, %c0_2] : memref<1x8x32xf32, #tpu.memory_space<vmem>>, vector<1x8x32xf32>
    %4 = vector.shape_cast %3 : vector<1x8x32xf32> to vector<8x32xf32>
    %cst = arith.constant 0.176776692 : f32
    %5 = vector.broadcast %cst : f32 to vector<8x32xf32>
    %6 = arith.mulf %4, %5 : vector<8x32xf32>
    %c0_3 = arith.constant 0 : index
    %c0_4 = arith.constant 0 : index
    %c0_5 = arith.constant 0 : index
    %7 = vector.load %arg4[%c0_3, %c0_4, %c0_5] : memref<1x8x32xf32, #tpu.memory_space<vmem>>, vector<1x8x32xf32>
    %8 = vector.shape_cast %7 : vector<1x8x32xf32> to vector<8x32xf32>
    %c0_6 = arith.constant 0 : index
    %c0_7 = arith.constant 0 : index
    %c0_8 = arith.constant 0 : index
    %9 = vector.load %arg5[%c0_6, %c0_7, %c0_8] : memref<1x8x32xf32, #tpu.memory_space<vmem>>, vector<1x8x32xf32>
    %10 = vector.shape_cast %9 : vector<1x8x32xf32> to vector<8x32xf32>
    %c0_9 = arith.constant 0 : index
    %c0_10 = arith.constant 0 : index
    %c0_11 = arith.constant 0 : index
    %11 = vector.load %arg6[%c0_9, %c0_10, %c0_11] : memref<1x8x8xi8, #tpu.memory_space<vmem>>, vector<1x8x8xi8>
    %12 = vector.shape_cast %11 : vector<1x8x8xi8> to vector<8x8xi8>
    %13 = arith.extsi %12 : vector<8x8xi8> to vector<8x8xi32>
    %c0_i32_12 = arith.constant 0 : i32
    %14 = vector.broadcast %c0_i32_12 : i32 to vector<8x8xi32>
    %15 = arith.cmpi eq, %13, %14 : vector<8x8xi32>
    %16 = vector.extract_strided_slice %6 {offsets = [0, 0], sizes = [8, 8], strides = [1, 1]} : vector<8x32xf32> to vector<8x8xf32>
    %17 = vector.extract_strided_slice %8 {offsets = [0, 0], sizes = [8, 8], strides = [1, 1]} : vector<8x32xf32> to vector<8x8xf32>
    %18 = vector.extract_strided_slice %10 {offsets = [0, 0], sizes = [8, 8], strides = [1, 1]} : vector<8x32xf32> to vector<8x8xf32>
    %cst_13 = arith.constant dense<0.000000e+00> : vector<8x8xf32>
    %19 = tpu.matmul %16, %17, %cst_13 {dimension_numbers = #tpu.dot_dimension_numbers<[1], [1], [0], [0], [0, 0, 1, 0], [], []>} : vector<8x8xf32>, vector<8x8xf32>, vector<8x8xf32> -> vector<8x8xf32>
    %cst_14 = arith.constant -1.000000e+20 : f32
    %20 = vector.broadcast %cst_14 : f32 to vector<8x8xf32>
    %21 = arith.select %15, %20, %19 : vector<8x8xi1>, vector<8x8xf32>
    %c0_15 = arith.constant 0 : index
    %c0_16 = arith.constant 0 : index
    %c0_17 = arith.constant 0 : index
    %22 = vector.load %arg10[%c0_15, %c0_16, %c0_17] : memref<4x8x1xf32, #tpu.memory_space<vmem>>, vector<1x8x1xf32>
    %23 = vector.shape_cast %22 : vector<1x8x1xf32> to vector<8x1xf32>
    %cst_18 = arith.constant dense<0xFF800000> : vector<8xf32>
    %24 = vector.multi_reduction <maximumf>, %21, %cst_18 [1] : vector<8x8xf32> to vector<8xf32>
    %25 = vector.shape_cast %24 : vector<8xf32> to vector<8x1xf32>
    %26 = arith.maximumf %23, %25 : vector<8x1xf32>
    %27 = arith.subf %23, %26 : vector<8x1xf32>
    %28 = math.exp %27 : vector<8x1xf32>
    %29 = vector.broadcast %26 : vector<8x1xf32> to vector<8x8xf32>
    %30 = arith.subf %21, %29 : vector<8x8xf32>
    %31 = math.exp %30 : vector<8x8xf32>
    %c0_19 = arith.constant 0 : index
    %c0_20 = arith.constant 0 : index
    %c0_21 = arith.constant 0 : index
    %32 = vector.load %arg11[%c0_19, %c0_20, %c0_21] : memref<4x8x1xf32, #tpu.memory_space<vmem>>, vector<1x8x1xf32>
    %33 = vector.shape_cast %32 : vector<1x8x1xf32> to vector<8x1xf32>
    %34 = arith.mulf %28, %33 : vector<8x1xf32>
    %cst_22 = arith.constant dense<0.000000e+00> : vector<8xf32>
    %35 = vector.multi_reduction <add>, %31, %cst_22 [1] : vector<8x8xf32> to vector<8xf32>
    %36 = vector.shape_cast %35 : vector<8xf32> to vector<8x1xf32>
    %37 = arith.addf %34, %36 : vector<8x1xf32>
    %c0_23 = arith.constant 0 : index
    %c0_24 = arith.constant 0 : index
    %c0_25 = arith.constant 0 : index
    %38 = vector.load %arg11[%c0_23, %c0_24, %c0_25] : memref<4x8x1xf32, #tpu.memory_space<vmem>>, vector<1x8x1xf32>
    %39 = vector.shape_cast %38 : vector<1x8x1xf32> to vector<8x1xf32>
    %40 = vector.shape_cast %37 : vector<8x1xf32> to vector<1x8x1xf32>
    tpu.vector_store %arg11[%c0_23, %c0_24, %c0_25], %40 {strides = array<i32>} : memref<4x8x1xf32, #tpu.memory_space<vmem>>, vector<1x8x1xf32>,
    %c0_26 = arith.constant 0 : index
    %c0_27 = arith.constant 0 : index
    %c0_28 = arith.constant 0 : index
    %41 = vector.load %arg10[%c0_26, %c0_27, %c0_28] : memref<4x8x1xf32, #tpu.memory_space<vmem>>, vector<1x8x1xf32>
    %42 = vector.shape_cast %41 : vector<1x8x1xf32> to vector<8x1xf32>
    %43 = vector.shape_cast %26 : vector<8x1xf32> to vector<1x8x1xf32>
    tpu.vector_store %arg10[%c0_26, %c0_27, %c0_28], %43 {strides = array<i32>} : memref<4x8x1xf32, #tpu.memory_space<vmem>>, vector<1x8x1xf32>,
    %c0_29 = arith.constant 0 : index
    %c0_30 = arith.constant 0 : index
    %c0_31 = arith.constant 0 : index
    %44 = vector.load %arg12[%c0_29, %c0_30, %c0_31] : memref<4x8x8xf32, #tpu.memory_space<vmem>>, vector<1x8x8xf32>
    %45 = vector.shape_cast %44 : vector<1x8x8xf32> to vector<8x8xf32>
    %46 = vector.broadcast %28 : vector<8x1xf32> to vector<8x8xf32>
    %47 = arith.mulf %46, %45 : vector<8x8xf32>
    %cst_32 = arith.constant dense<0.000000e+00> : vector<8x8xf32>
    %48 = tpu.matmul %31, %18, %cst_32 {dimension_numbers = #tpu.dot_dimension_numbers<[1], [0], [0], [1], [0, 0, 1, 1], [], []>} : vector<8x8xf32>, vector<8x8xf32>, vector<8x8xf32> -> vector<8x8xf32>
    %49 = arith.addf %47, %48 : vector<8x8xf32>
    %c0_33 = arith.constant 0 : index
    %c0_34 = arith.constant 0 : index
    %c0_35 = arith.constant 0 : index
    %50 = vector.load %arg12[%c0_33, %c0_34, %c0_35] : memref<4x8x8xf32, #tpu.memory_space<vmem>>, vector<1x8x8xf32>
    %51 = vector.shape_cast %50 : vector<1x8x8xf32> to vector<8x8xf32>
    %52 = vector.shape_cast %49 : vector<8x8xf32> to vector<1x8x8xf32>
    tpu.vector_store %arg12[%c0_33, %c0_34, %c0_35], %52 {strides = array<i32>} : memref<4x8x8xf32, #tpu.memory_space<vmem>>, vector<1x8x8xf32>,
    %53 = vector.extract_strided_slice %6 {offsets = [0, 8], sizes = [8, 8], strides = [1, 1]} : vector<8x32xf32> to vector<8x8xf32>
    %54 = vector.extract_strided_slice %8 {offsets = [0, 8], sizes = [8, 8], strides = [1, 1]} : vector<8x32xf32> to vector<8x8xf32>
    %55 = vector.extract_strided_slice %10 {offsets = [0, 8], sizes = [8, 8], strides = [1, 1]} : vector<8x32xf32> to vector<8x8xf32>
    %cst_36 = arith.constant dense<0.000000e+00> : vector<8x8xf32>
    %56 = tpu.matmul %53, %54, %cst_36 {dimension_numbers = #tpu.dot_dimension_numbers<[1], [1], [0], [0], [0, 0, 1, 0], [], []>} : vector<8x8xf32>, vector<8x8xf32>, vector<8x8xf32> -> vector<8x8xf32>
    %cst_37 = arith.constant -1.000000e+20 : f32
    %57 = vector.broadcast %cst_37 : f32 to vector<8x8xf32>
    %58 = arith.select %15, %57, %56 : vector<8x8xi1>, vector<8x8xf32>
    %c1 = arith.constant 1 : index
    %c0_38 = arith.constant 0 : index
    %c0_39 = arith.constant 0 : index
    %59 = vector.load %arg10[%c1, %c0_38, %c0_39] : memref<4x8x1xf32, #tpu.memory_space<vmem>>, vector<1x8x1xf32>
    %60 = vector.shape_cast %59 : vector<1x8x1xf32> to vector<8x1xf32>
    %cst_40 = arith.constant dense<0xFF800000> : vector<8xf32>
    %61 = vector.multi_reduction <maximumf>, %58, %cst_40 [1] : vector<8x8xf32> to vector<8xf32>
    %62 = vector.shape_cast %61 : vector<8xf32> to vector<8x1xf32>
    %63 = arith.maximumf %60, %62 : vector<8x1xf32>
    %64 = arith.subf %60, %63 : vector<8x1xf32>
    %65 = math.exp %64 : vector<8x1xf32>
    %66 = vector.broadcast %63 : vector<8x1xf32> to vector<8x8xf32>
    %67 = arith.subf %58, %66 : vector<8x8xf32>
    %68 = math.exp %67 : vector<8x8xf32>
    %c1_41 = arith.constant 1 : index
    %c0_42 = arith.constant 0 : index
    %c0_43 = arith.constant 0 : index
    %69 = vector.load %arg11[%c1_41, %c0_42, %c0_43] : memref<4x8x1xf32, #tpu.memory_space<vmem>>, vector<1x8x1xf32>
    %70 = vector.shape_cast %69 : vector<1x8x1xf32> to vector<8x1xf32>
    %71 = arith.mulf %65, %70 : vector<8x1xf32>
    %cst_44 = arith.constant dense<0.000000e+00> : vector<8xf32>
    %72 = vector.multi_reduction <add>, %68, %cst_44 [1] : vector<8x8xf32> to vector<8xf32>
    %73 = vector.shape_cast %72 : vector<8xf32> to vector<8x1xf32>
    %74 = arith.addf %71, %73 : vector<8x1xf32>
    %c1_45 = arith.constant 1 : index
    %c0_46 = arith.constant 0 : index
    %c0_47 = arith.constant 0 : index
    %75 = vector.load %arg11[%c1_45, %c0_46, %c0_47] : memref<4x8x1xf32, #tpu.memory_space<vmem>>, vector<1x8x1xf32>
    %76 = vector.shape_cast %75 : vector<1x8x1xf32> to vector<8x1xf32>
    %77 = vector.shape_cast %74 : vector<8x1xf32> to vector<1x8x1xf32>
    tpu.vector_store %arg11[%c1_45, %c0_46, %c0_47], %77 {strides = array<i32>} : memref<4x8x1xf32, #tpu.memory_space<vmem>>, vector<1x8x1xf32>,
    %c1_48 = arith.constant 1 : index
    %c0_49 = arith.constant 0 : index
    %c0_50 = arith.constant 0 : index
    %78 = vector.load %arg10[%c1_48, %c0_49, %c0_50] : memref<4x8x1xf32, #tpu.memory_space<vmem>>, vector<1x8x1xf32>
    %79 = vector.shape_cast %78 : vector<1x8x1xf32> to vector<8x1xf32>
    %80 = vector.shape_cast %63 : vector<8x1xf32> to vector<1x8x1xf32>
    tpu.vector_store %arg10[%c1_48, %c0_49, %c0_50], %80 {strides = array<i32>} : memref<4x8x1xf32, #tpu.memory_space<vmem>>, vector<1x8x1xf32>,
    %c1_51 = arith.constant 1 : index
    %c0_52 = arith.constant 0 : index
    %c0_53 = arith.constant 0 : index
    %81 = vector.load %arg12[%c1_51, %c0_52, %c0_53] : memref<4x8x8xf32, #tpu.memory_space<vmem>>, vector<1x8x8xf32>
    %82 = vector.shape_cast %81 : vector<1x8x8xf32> to vector<8x8xf32>
    %83 = vector.broadcast %65 : vector<8x1xf32> to vector<8x8xf32>
    %84 = arith.mulf %83, %82 : vector<8x8xf32>
    %cst_54 = arith.constant dense<0.000000e+00> : vector<8x8xf32>
    %85 = tpu.matmul %68, %55, %cst_54 {dimension_numbers = #tpu.dot_dimension_numbers<[1], [0], [0], [1], [0, 0, 1, 1], [], []>} : vector<8x8xf32>, vector<8x8xf32>, vector<8x8xf32> -> vector<8x8xf32>
    %86 = arith.addf %84, %85 : vector<8x8xf32>
    %c1_55 = arith.constant 1 : index
    %c0_56 = arith.constant 0 : index
    %c0_57 = arith.constant 0 : index
    %87 = vector.load %arg12[%c1_55, %c0_56, %c0_57] : memref<4x8x8xf32, #tpu.memory_space<vmem>>, vector<1x8x8xf32>
    %88 = vector.shape_cast %87 : vector<1x8x8xf32> to vector<8x8xf32>
    %89 = vector.shape_cast %86 : vector<8x8xf32> to vector<1x8x8xf32>
    tpu.vector_store %arg12[%c1_55, %c0_56, %c0_57], %89 {strides = array<i32>} : memref<4x8x8xf32, #tpu.memory_space<vmem>>, vector<1x8x8xf32>,
    %90 = vector.extract_strided_slice %6 {offsets = [0, 16], sizes = [8, 8], strides = [1, 1]} : vector<8x32xf32> to vector<8x8xf32>
    %91 = vector.extract_strided_slice %8 {offsets = [0, 16], sizes = [8, 8], strides = [1, 1]} : vector<8x32xf32> to vector<8x8xf32>
    %92 = vector.extract_strided_slice %10 {offsets = [0, 16], sizes = [8, 8], strides = [1, 1]} : vector<8x32xf32> to vector<8x8xf32>
    %cst_58 = arith.constant dense<0.000000e+00> : vector<8x8xf32>
    %93 = tpu.matmul %90, %91, %cst_58 {dimension_numbers = #tpu.dot_dimension_numbers<[1], [1], [0], [0], [0, 0, 1, 0], [], []>} : vector<8x8xf32>, vector<8x8xf32>, vector<8x8xf32> -> vector<8x8xf32>
    %cst_59 = arith.constant -1.000000e+20 : f32
    %94 = vector.broadcast %cst_59 : f32 to vector<8x8xf32>
    %95 = arith.select %15, %94, %93 : vector<8x8xi1>, vector<8x8xf32>
    %c2 = arith.constant 2 : index
    %c0_60 = arith.constant 0 : index
    %c0_61 = arith.constant 0 : index
    %96 = vector.load %arg10[%c2, %c0_60, %c0_61] : memref<4x8x1xf32, #tpu.memory_space<vmem>>, vector<1x8x1xf32>
    %97 = vector.shape_cast %96 : vector<1x8x1xf32> to vector<8x1xf32>
    %cst_62 = arith.constant dense<0xFF800000> : vector<8xf32>
    %98 = vector.multi_reduction <maximumf>, %95, %cst_62 [1] : vector<8x8xf32> to vector<8xf32>
    %99 = vector.shape_cast %98 : vector<8xf32> to vector<8x1xf32>
    %100 = arith.maximumf %97, %99 : vector<8x1xf32>
    %101 = arith.subf %97, %100 : vector<8x1xf32>
    %102 = math.exp %101 : vector<8x1xf32>
    %103 = vector.broadcast %100 : vector<8x1xf32> to vector<8x8xf32>
    %104 = arith.subf %95, %103 : vector<8x8xf32>
    %105 = math.exp %104 : vector<8x8xf32>
    %c2_63 = arith.constant 2 : index
    %c0_64 = arith.constant 0 : index
    %c0_65 = arith.constant 0 : index
    %106 = vector.load %arg11[%c2_63, %c0_64, %c0_65] : memref<4x8x1xf32, #tpu.memory_space<vmem>>, vector<1x8x1xf32>
    %107 = vector.shape_cast %106 : vector<1x8x1xf32> to vector<8x1xf32>
    %108 = arith.mulf %102, %107 : vector<8x1xf32>
    %cst_66 = arith.constant dense<0.000000e+00> : vector<8xf32>
    %109 = vector.multi_reduction <add>, %105, %cst_66 [1] : vector<8x8xf32> to vector<8xf32>
    %110 = vector.shape_cast %109 : vector<8xf32> to vector<8x1xf32>
    %111 = arith.addf %108, %110 : vector<8x1xf32>
    %c2_67 = arith.constant 2 : index
    %c0_68 = arith.constant 0 : index
    %c0_69 = arith.constant 0 : index
    %112 = vector.load %arg11[%c2_67, %c0_68, %c0_69] : memref<4x8x1xf32, #tpu.memory_space<vmem>>, vector<1x8x1xf32>
    %113 = vector.shape_cast %112 : vector<1x8x1xf32> to vector<8x1xf32>
    %114 = vector.shape_cast %111 : vector<8x1xf32> to vector<1x8x1xf32>
    tpu.vector_store %arg11[%c2_67, %c0_68, %c0_69], %114 {strides = array<i32>} : memref<4x8x1xf32, #tpu.memory_space<vmem>>, vector<1x8x1xf32>,
    %c2_70 = arith.constant 2 : index
    %c0_71 = arith.constant 0 : index
    %c0_72 = arith.constant 0 : index
    %115 = vector.load %arg10[%c2_70, %c0_71, %c0_72] : memref<4x8x1xf32, #tpu.memory_space<vmem>>, vector<1x8x1xf32>
    %116 = vector.shape_cast %115 : vector<1x8x1xf32> to vector<8x1xf32>
    %117 = vector.shape_cast %100 : vector<8x1xf32> to vector<1x8x1xf32>
    tpu.vector_store %arg10[%c2_70, %c0_71, %c0_72], %117 {strides = array<i32>} : memref<4x8x1xf32, #tpu.memory_space<vmem>>, vector<1x8x1xf32>,
    %c2_73 = arith.constant 2 : index
    %c0_74 = arith.constant 0 : index
    %c0_75 = arith.constant 0 : index
    %118 = vector.load %arg12[%c2_73, %c0_74, %c0_75] : memref<4x8x8xf32, #tpu.memory_space<vmem>>, vector<1x8x8xf32>
    %119 = vector.shape_cast %118 : vector<1x8x8xf32> to vector<8x8xf32>
    %120 = vector.broadcast %102 : vector<8x1xf32> to vector<8x8xf32>
    %121 = arith.mulf %120, %119 : vector<8x8xf32>
    %cst_76 = arith.constant dense<0.000000e+00> : vector<8x8xf32>
    %122 = tpu.matmul %105, %92, %cst_76 {dimension_numbers = #tpu.dot_dimension_numbers<[1], [0], [0], [1], [0, 0, 1, 1], [], []>} : vector<8x8xf32>, vector<8x8xf32>, vector<8x8xf32> -> vector<8x8xf32>
    %123 = arith.addf %121, %122 : vector<8x8xf32>
    %c2_77 = arith.constant 2 : index
    %c0_78 = arith.constant 0 : index
    %c0_79 = arith.constant 0 : index
    %124 = vector.load %arg12[%c2_77, %c0_78, %c0_79] : memref<4x8x8xf32, #tpu.memory_space<vmem>>, vector<1x8x8xf32>
    %125 = vector.shape_cast %124 : vector<1x8x8xf32> to vector<8x8xf32>
    %126 = vector.shape_cast %123 : vector<8x8xf32> to vector<1x8x8xf32>
    tpu.vector_store %arg12[%c2_77, %c0_78, %c0_79], %126 {strides = array<i32>} : memref<4x8x8xf32, #tpu.memory_space<vmem>>, vector<1x8x8xf32>,
    %127 = vector.extract_strided_slice %6 {offsets = [0, 24], sizes = [8, 8], strides = [1, 1]} : vector<8x32xf32> to vector<8x8xf32>
    %128 = vector.extract_strided_slice %8 {offsets = [0, 24], sizes = [8, 8], strides = [1, 1]} : vector<8x32xf32> to vector<8x8xf32>
    %129 = vector.extract_strided_slice %10 {offsets = [0, 24], sizes = [8, 8], strides = [1, 1]} : vector<8x32xf32> to vector<8x8xf32>
    %cst_80 = arith.constant dense<0.000000e+00> : vector<8x8xf32>
    %130 = tpu.matmul %127, %128, %cst_80 {dimension_numbers = #tpu.dot_dimension_numbers<[1], [1], [0], [0], [0, 0, 1, 0], [], []>} : vector<8x8xf32>, vector<8x8xf32>, vector<8x8xf32> -> vector<8x8xf32>
    %cst_81 = arith.constant -1.000000e+20 : f32
    %131 = vector.broadcast %cst_81 : f32 to vector<8x8xf32>
    %132 = arith.select %15, %131, %130 : vector<8x8xi1>, vector<8x8xf32>
    %c3 = arith.constant 3 : index
    %c0_82 = arith.constant 0 : index
    %c0_83 = arith.constant 0 : index
    %133 = vector.load %arg10[%c3, %c0_82, %c0_83] : memref<4x8x1xf32, #tpu.memory_space<vmem>>, vector<1x8x1xf32>
    %134 = vector.shape_cast %133 : vector<1x8x1xf32> to vector<8x1xf32>
    %cst_84 = arith.constant dense<0xFF800000> : vector<8xf32>
    %135 = vector.multi_reduction <maximumf>, %132, %cst_84 [1] : vector<8x8xf32> to vector<8xf32>
    %136 = vector.shape_cast %135 : vector<8xf32> to vector<8x1xf32>
    %137 = arith.maximumf %134, %136 : vector<8x1xf32>
    %138 = arith.subf %134, %137 : vector<8x1xf32>
    %139 = math.exp %138 : vector<8x1xf32>
    %140 = vector.broadcast %137 : vector<8x1xf32> to vector<8x8xf32>
    %141 = arith.subf %132, %140 : vector<8x8xf32>
    %142 = math.exp %141 : vector<8x8xf32>
    %c3_85 = arith.constant 3 : index
    %c0_86 = arith.constant 0 : index
    %c0_87 = arith.constant 0 : index
    %143 = vector.load %arg11[%c3_85, %c0_86, %c0_87] : memref<4x8x1xf32, #tpu.memory_space<vmem>>, vector<1x8x1xf32>
    %144 = vector.shape_cast %143 : vector<1x8x1xf32> to vector<8x1xf32>
    %145 = arith.mulf %139, %144 : vector<8x1xf32>
    %cst_88 = arith.constant dense<0.000000e+00> : vector<8xf32>
    %146 = vector.multi_reduction <add>, %142, %cst_88 [1] : vector<8x8xf32> to vector<8xf32>
    %147 = vector.shape_cast %146 : vector<8xf32> to vector<8x1xf32>
    %148 = arith.addf %145, %147 : vector<8x1xf32>
    %c3_89 = arith.constant 3 : index
    %c0_90 = arith.constant 0 : index
    %c0_91 = arith.constant 0 : index
    %149 = vector.load %arg11[%c3_89, %c0_90, %c0_91] : memref<4x8x1xf32, #tpu.memory_space<vmem>>, vector<1x8x1xf32>
    %150 = vector.shape_cast %149 : vector<1x8x1xf32> to vector<8x1xf32>
    %151 = vector.shape_cast %148 : vector<8x1xf32> to vector<1x8x1xf32>
    tpu.vector_store %arg11[%c3_89, %c0_90, %c0_91], %151 {strides = array<i32>} : memref<4x8x1xf32, #tpu.memory_space<vmem>>, vector<1x8x1xf32>,
    %c3_92 = arith.constant 3 : index
    %c0_93 = arith.constant 0 : index
    %c0_94 = arith.constant 0 : index
    %152 = vector.load %arg10[%c3_92, %c0_93, %c0_94] : memref<4x8x1xf32, #tpu.memory_space<vmem>>, vector<1x8x1xf32>
    %153 = vector.shape_cast %152 : vector<1x8x1xf32> to vector<8x1xf32>
    %154 = vector.shape_cast %137 : vector<8x1xf32> to vector<1x8x1xf32>
    tpu.vector_store %arg10[%c3_92, %c0_93, %c0_94], %154 {strides = array<i32>} : memref<4x8x1xf32, #tpu.memory_space<vmem>>, vector<1x8x1xf32>,
    %c3_95 = arith.constant 3 : index
    %c0_96 = arith.constant 0 : index
    %c0_97 = arith.constant 0 : index
    %155 = vector.load %arg12[%c3_95, %c0_96, %c0_97] : memref<4x8x8xf32, #tpu.memory_space<vmem>>, vector<1x8x8xf32>
    %156 = vector.shape_cast %155 : vector<1x8x8xf32> to vector<8x8xf32>
    %157 = vector.broadcast %139 : vector<8x1xf32> to vector<8x8xf32>
    %158 = arith.mulf %157, %156 : vector<8x8xf32>
    %cst_98 = arith.constant dense<0.000000e+00> : vector<8x8xf32>
    %159 = tpu.matmul %142, %129, %cst_98 {dimension_numbers = #tpu.dot_dimension_numbers<[1], [0], [0], [1], [0, 0, 1, 1], [], []>} : vector<8x8xf32>, vector<8x8xf32>, vector<8x8xf32> -> vector<8x8xf32>
    %160 = arith.addf %158, %159 : vector<8x8xf32>
    %c3_99 = arith.constant 3 : index
    %c0_100 = arith.constant 0 : index
    %c0_101 = arith.constant 0 : index
    %161 = vector.load %arg12[%c3_99, %c0_100, %c0_101] : memref<4x8x8xf32, #tpu.memory_space<vmem>>, vector<1x8x8xf32>
    %162 = vector.shape_cast %161 : vector<1x8x8xf32> to vector<8x8xf32>
    %163 = vector.shape_cast %160 : vector<8x8xf32> to vector<1x8x8xf32>
    tpu.vector_store %arg12[%c3_99, %c0_100, %c0_101], %163 {strides = array<i32>} : memref<4x8x8xf32, #tpu.memory_space<vmem>>, vector<1x8x8xf32>,
    %c0_i32_102 = arith.constant 0 : i32
    %164 = arith.cmpi eq, %arg2, %c0_i32_102 : i32
    %165 = arith.extui %164 : i1 to i32
    %c0_i32_103 = arith.constant 0 : i32
    %166 = arith.cmpi ne, %165, %c0_i32_103 : i32
    scf.if %166 {
      %cst_104 = arith.constant 0.000000e+00 : f32
      %167 = vector.broadcast %cst_104 : f32 to vector<8x32xf32>
      %c0_105 = arith.constant 0 : index
      %c0_106 = arith.constant 0 : index
      %c0_107 = arith.constant 0 : index
      %168 = vector.load %arg11[%c0_105, %c0_106, %c0_107] : memref<4x8x1xf32, #tpu.memory_space<vmem>>, vector<1x8x1xf32>
      %169 = vector.shape_cast %168 : vector<1x8x1xf32> to vector<8x1xf32>
      %170 = tpu.reciprocal %169 {approx = true} : vector<8x1xf32> -> vector<8x1xf32>
      %c0_108 = arith.constant 0 : index
      %c0_109 = arith.constant 0 : index
      %c0_110 = arith.constant 0 : index
      %171 = vector.load %arg12[%c0_108, %c0_109, %c0_110] : memref<4x8x8xf32, #tpu.memory_space<vmem>>, vector<1x8x8xf32>
      %172 = vector.shape_cast %171 : vector<1x8x8xf32> to vector<8x8xf32>
      %173 = vector.broadcast %170 : vector<8x1xf32> to vector<8x8xf32>
      %174 = arith.mulf %172, %173 : vector<8x8xf32>
      %c0_111 = arith.constant 0 : index
      %c0_112 = arith.constant 0 : index
      %175 = vector.load %arg7[%c0_111, %c0_112] : memref<32x32xf32, #tpu.memory_space<vmem>>, vector<8x32xf32>
      %cst_113 = arith.constant dense<0.000000e+00> : vector<8x32xf32>
      %176 = tpu.matmul %174, %175, %cst_113 {dimension_numbers = #tpu.dot_dimension_numbers<[1], [0], [0], [1], [0, 0, 1, 1], [], []>} : vector<8x8xf32>, vector<8x32xf32>, vector<8x32xf32> -> vector<8x32xf32>
      %177 = arith.addf %167, %176 : vector<8x32xf32>
      %c1_114 = arith.constant 1 : index
      %c0_115 = arith.constant 0 : index
      %c0_116 = arith.constant 0 : index
      %178 = vector.load %arg11[%c1_114, %c0_115, %c0_116] : memref<4x8x1xf32, #tpu.memory_space<vmem>>, vector<1x8x1xf32>
      %179 = vector.shape_cast %178 : vector<1x8x1xf32> to vector<8x1xf32>
      %180 = tpu.reciprocal %179 {approx = true} : vector<8x1xf32> -> vector<8x1xf32>
      %c1_117 = arith.constant 1 : index
      %c0_118 = arith.constant 0 : index
      %c0_119 = arith.constant 0 : index
      %181 = vector.load %arg12[%c1_117, %c0_118, %c0_119] : memref<4x8x8xf32, #tpu.memory_space<vmem>>, vector<1x8x8xf32>
      %182 = vector.shape_cast %181 : vector<1x8x8xf32> to vector<8x8xf32>
      %183 = vector.broadcast %180 : vector<8x1xf32> to vector<8x8xf32>
      %184 = arith.mulf %182, %183 : vector<8x8xf32>
      %c8 = arith.constant 8 : index
      %c0_120 = arith.constant 0 : index
      %185 = vector.load %arg7[%c8, %c0_120] : memref<32x32xf32, #tpu.memory_space<vmem>>, vector<8x32xf32>
      %cst_121 = arith.constant dense<0.000000e+00> : vector<8x32xf32>
      %186 = tpu.matmul %184, %185, %cst_121 {dimension_numbers = #tpu.dot_dimension_numbers<[1], [0], [0], [1], [0, 0, 1, 1], [], []>} : vector<8x8xf32>, vector<8x32xf32>, vector<8x32xf32> -> vector<8x32xf32>
      %187 = arith.addf %177, %186 : vector<8x32xf32>
      %c2_122 = arith.constant 2 : index
      %c0_123 = arith.constant 0 : index
      %c0_124 = arith.constant 0 : index
      %188 = vector.load %arg11[%c2_122, %c0_123, %c0_124] : memref<4x8x1xf32, #tpu.memory_space<vmem>>, vector<1x8x1xf32>
      %189 = vector.shape_cast %188 : vector<1x8x1xf32> to vector<8x1xf32>
      %190 = tpu.reciprocal %189 {approx = true} : vector<8x1xf32> -> vector<8x1xf32>
      %c2_125 = arith.constant 2 : index
      %c0_126 = arith.constant 0 : index
      %c0_127 = arith.constant 0 : index
      %191 = vector.load %arg12[%c2_125, %c0_126, %c0_127] : memref<4x8x8xf32, #tpu.memory_space<vmem>>, vector<1x8x8xf32>
      %192 = vector.shape_cast %191 : vector<1x8x8xf32> to vector<8x8xf32>
      %193 = vector.broadcast %190 : vector<8x1xf32> to vector<8x8xf32>
      %194 = arith.mulf %192, %193 : vector<8x8xf32>
      %c16 = arith.constant 16 : index
      %c0_128 = arith.constant 0 : index
      %195 = vector.load %arg7[%c16, %c0_128] : memref<32x32xf32, #tpu.memory_space<vmem>>, vector<8x32xf32>
      %cst_129 = arith.constant dense<0.000000e+00> : vector<8x32xf32>
      %196 = tpu.matmul %194, %195, %cst_129 {dimension_numbers = #tpu.dot_dimension_numbers<[1], [0], [0], [1], [0, 0, 1, 1], [], []>} : vector<8x8xf32>, vector<8x32xf32>, vector<8x32xf32> -> vector<8x32xf32>
      %197 = arith.addf %187, %196 : vector<8x32xf32>
      %c3_130 = arith.constant 3 : index
      %c0_131 = arith.constant 0 : index
      %c0_132 = arith.constant 0 : index
      %198 = vector.load %arg11[%c3_130, %c0_131, %c0_132] : memref<4x8x1xf32, #tpu.memory_space<vmem>>, vector<1x8x1xf32>
      %199 = vector.shape_cast %198 : vector<1x8x1xf32> to vector<8x1xf32>
      %200 = tpu.reciprocal %199 {approx = true} : vector<8x1xf32> -> vector<8x1xf32>
      %c3_133 = arith.constant 3 : index
      %c0_134 = arith.constant 0 : index
      %c0_135 = arith.constant 0 : index
      %201 = vector.load %arg12[%c3_133, %c0_134, %c0_135] : memref<4x8x8xf32, #tpu.memory_space<vmem>>, vector<1x8x8xf32>
      %202 = vector.shape_cast %201 : vector<1x8x8xf32> to vector<8x8xf32>
      %203 = vector.broadcast %200 : vector<8x1xf32> to vector<8x8xf32>
      %204 = arith.mulf %202, %203 : vector<8x8xf32>
      %c24 = arith.constant 24 : index
      %c0_136 = arith.constant 0 : index
      %205 = vector.load %arg7[%c24, %c0_136] : memref<32x32xf32, #tpu.memory_space<vmem>>, vector<8x32xf32>
      %cst_137 = arith.constant dense<0.000000e+00> : vector<8x32xf32>
      %206 = tpu.matmul %204, %205, %cst_137 {dimension_numbers = #tpu.dot_dimension_numbers<[1], [0], [0], [1], [0, 0, 1, 1], [], []>} : vector<8x8xf32>, vector<8x32xf32>, vector<8x32xf32> -> vector<8x32xf32>
      %207 = arith.addf %197, %206 : vector<8x32xf32>
      %c0_138 = arith.constant 0 : index
      %c0_139 = arith.constant 0 : index
      %208 = vector.load %arg8[%c0_138, %c0_139] : memref<1x32xf32, #tpu.memory_space<vmem>>, vector<1x32xf32>
      %209 = vector.broadcast %208 : vector<1x32xf32> to vector<8x32xf32>
      %210 = arith.addf %207, %209 : vector<8x32xf32>
      %c0_140 = arith.constant 0 : index
      %c0_141 = arith.constant 0 : index
      %c0_142 = arith.constant 0 : index
      %211 = vector.load %arg9[%c0_140, %c0_141, %c0_142] : memref<1x8x32xf32, #tpu.memory_space<vmem>>, vector<1x8x32xf32>
      %212 = vector.shape_cast %211 : vector<1x8x32xf32> to vector<8x32xf32>
      %213 = vector.shape_cast %210 : vector<8x32xf32> to vector<1x8x32xf32>
      tpu.vector_store %arg9[%c0_140, %c0_141, %c0_142], %213 {strides = array<i32>} : memref<1x8x32xf32, #tpu.memory_space<vmem>>, vector<1x8x32xf32>,
    } else {
    }
    return
  }
  func.func @transform_0(%arg0: i32, %arg1: i32, %arg2: i32) -> (i32, i32, i32) {
    %c0_i32 = arith.constant 0 : i32
    %c0_i32_0 = arith.constant 0 : i32
    return %arg0, %arg1, %c0_i32 : i32, i32, i32
  }
  func.func @transform_1(%arg0: i32, %arg1: i32, %arg2: i32) -> (i32, i32, i32) {
    %c0_i32 = arith.constant 0 : i32
    %c0_i32_0 = arith.constant 0 : i32
    return %arg0, %arg2, %c0_i32 : i32, i32, i32
  }
  func.func @transform_2(%arg0: i32, %arg1: i32, %arg2: i32) -> (i32, i32, i32) {
    %c0_i32 = arith.constant 0 : i32
    %c0_i32_0 = arith.constant 0 : i32
    return %arg0, %arg2, %c0_i32 : i32, i32, i32
  }
  func.func @transform_3(%arg0: i32, %arg1: i32, %arg2: i32) -> (i32, i32, i32) {
    %c0_i32 = arith.constant 0 : i32
    return %arg0, %arg1, %arg2 : i32, i32, i32
  }
  func.func @transform_4(%arg0: i32, %arg1: i32, %arg2: i32) -> (i32, i32) {
    %c0_i32 = arith.constant 0 : i32
    %c0_i32_0 = arith.constant 0 : i32
    %c0_i32_1 = arith.constant 0 : i32
    return %c0_i32, %c0_i32_0 : i32, i32
  }
  func.func @transform_5(%arg0: i32, %arg1: i32, %arg2: i32) -> (i32, i32) {
    %c0_i32 = arith.constant 0 : i32
    %c0_i32_0 = arith.constant 0 : i32
    %c0_i32_1 = arith.constant 0 : i32
    return %c0_i32, %c0_i32_0 : i32, i32
  }
  func.func @transform_6(%arg0: i32, %arg1: i32, %arg2: i32) -> (i32, i32, i32) {
    %c0_i32 = arith.constant 0 : i32
    %c0_i32_0 = arith.constant 0 : i32
    return %arg0, %arg1, %c0_i32 : i32, i32, i32
  }
}

</mosaic_0001>

<bundles_post_ra>
// kernel: tpu_custom_call.1
= control target key start
LH: loop header
LB: loop body
LE: loop exit
PB: predicated region body
PF: predicated region fallthrough
CT: control target
= control target key end

     0   :  { %s2579_s0 = inlined_call_operand.hbm [shape: f32[2,8,32], index: 0, kind: input, shape index: {}]   ;;  %s2580_s1 = inlined_call_operand.hbm [shape: f32[2,8,32], index: 1, kind: input, shape index: {}]   ;;  %s2581_s2 = inlined_call_operand.hbm [shape: f32[2,8,32], index: 2, kind: input, shape index: {}]   ;;  %s2582_s3 = inlined_call_operand.vmem [shape: s8[2,8,8], index: 3, kind: input, shape index: {}]   ;;  %s2583_s4 = inlined_call_operand.hbm [shape: f32[32,32], index: 4, kind: input, shape index: {}]   ;;  %s2584_s5 = inlined_call_operand.vmem [shape: f32[1,32], index: 5, kind: input, shape index: {}]   ;;  %s2585_s6 = inlined_call_operand.hbm [shape: f32[2,8,32], index: 6, kind: output, shape index: {}]  }
   0x1   :  { %2594 = sst [smem:[#allocation23_spill]] %s2580_s1 }
   0x2   :  { %11 = vsyncpa [#allocation6], 0 }
   0x3   :  { %13 = vsyncpa [#allocation6 + $0x1], 0 }
   0x4   :  { %14 = vsyncpa [#allocation9], 0 }
   0x5   :  { %16 = vsyncpa [#allocation9 + $0x1], 0 }
   0x6   :  { %17 = vsyncpa [#allocation12], 0 }
   0x7   :  { %18 = vsyncpa [#allocation7], 0 }
   0x8   :  { %20 = vsyncpa [#allocation7 + $0x1], 0  ;;  %s2214_s21 = smov 0   ;;  %s2216_s22 = smov 0  }
   0x9   :  { %s2218_s23 = smov 0   ;;  %s2220_s24 = smov 0  }
   0xa   :  { %s2222_s25 = smov 0   ;;  %s2224_s26 = smov 0  }
   0xb LB: > { %2595 = sst [smem:[#allocation18_spill]] %s2159_s25  ;;  %s45_s27 = sadd.s32 1, %s2159_s25  ;;  %s2163_s26 = sphi %s2224_s26, %s26_s26   ;;  %s2159_s25 = sphi %s2222_s25, %s2620_s25   ;;  %s2155_s24 = sphi %s2220_s24, %s2619_s24   ;;  %s2151_s23 = sphi %s2218_s23, %s2623_s23   ;;  %s2147_s22 = sphi %s2216_s22, %s2622_s22   ;;  %s2143_s21 = sphi %s2214_s21, %s2621_s21  }
   0xc   : > { %2596 = sst [smem:[#allocation19_spill]] %s2163_s26  ;;  %s54_s28 = sadd.s32 1, %s2151_s23 }
   0xd   : > { %p47_p0 = scmp.ge.s32.totalorder %s45_s27, 2  ;;  %p61_p1 = scmp.ne.s32.totalorder %s2151_s23, %s2147_s22 }
   0xe   : > { %p62_p2 = scmp.eq.s32.totalorder %s2163_s26, 0  ;;  %p1878_p5 = scmp.lt.s32.totalorder %s2163_s26, 2 }
   0xf   : > { %s2625_s27 = smov (%p47_p0, %s45_s27), 0  ;;  %s2586_s30 = sand.u32 1, %s2151_s23  }
  0x10   : > { %2597 = sst [smem:[#allocation20_spill]] %s2625_s27  ;;  %p63_p4 = por %p62_p2, %p61_p1 }
  0x11   : > { %s49_s29 = ssub.s32 %s2159_s25, %s2625_s27  ;;  %s2261_s7 = sshll.u32 %s2586_s30, 3 }
  0x12   : > { %p52_p6 = scmp.eq.s32.totalorder %s49_s29, 0  ;;  %s2264_s8 = sshll.u32 %s2159_s25, 7 }
  0x13   : > { %p2266_p7 = pnand %p1878_p5, %p63_p4  ;;  %s282_s11 = sand.u32 1, %s2163_s26  }
  0x14   : > { %s2271_s10 = scalar_select %p52_p6, %s2151_s23, %s54_s28  }
  0x15   : > { %s2600_s1 = sld [smem:[#allocation23_spill]]  ;;  %s286_s15 = scalar_lea.vmem [#allocation8], %s2261_s7 }
  0x16   : > { %2599 = sst [smem:[#allocation21_spill]] %s2271_s10  ;;  %s294_s16 = sshll.u32 %s286_s15, 4  ;;  %s295_s16 = int_to_ptr.vmem [resolvable:$true] %s294_s16 }
  0x17   : > { %s2279_s17 = scalar_lea.sflag [#allocation9], %s282_s11  ;;  %p2588_p8 = pneg %p2266_p7 }
  0x18   : > { %s1978_s18 = scalar_lea.vmem %s295_s16, 128  ;;  %s2165_s19 = smov [#allocation8]  }
  0x19   : > { %p1979_p9 = scmp.ne.s32.totalorder %s295_s16, %s1978_s18  ;;  %s1983_s20 = sshll.u32 %s2165_s19, 4  ;;  %s1984_s20 = int_to_ptr.vmem [resolvable:$false] %s1983_s20 }
  0x1a   : > { %s1985_s28 = scalar_lea.vmem %s1984_s20, 256  ;;  %p1986_p12 = scmp.lt.s32.totalorder %s295_s16, %s1984_s20 }
  0x1b   : > { %s292_s14 = scalar_lea.hbm %s2600_s1, %s2264_s8  ;;  %p1981_p10 = pnand %p1979_p9, %p2588_p8 }
  0x1c   : > { %p1987_p13 = scmp.lt.s32.totalorder %s1985_s28, %s1978_s18 }
  0x1d   : > { %p1982_p11 = pneg %p1981_p10 }
  0x1e   : > { %p1988_p0 = por %p1987_p13, %p1986_p12 }
  0x20   : > { %p1989_p2 = pnand %p1988_p0, %p1982_p11 }
  0x22   : > { %1992 = shalt.err (!%p1989_p2)
}
  0x23   : > { %1869 = dma.hbm_to_vmem [thread:$0]  (!%p2266_p7), %s292_s14, 128, %s295_s16, %s2279_s17  }
  0x24   : > { %s2290_s29 = sadd.s32 4294967295, %s2163_s26   ;;  %s1725_s11 = sadd.s32 4294967294, %s2163_s26  }
  0x25   : > { %p67_p4 = scmp.ne.s32.totalorder %s2147_s22, %s2143_s21  ;;  %p2587_p5 = scmp.eq.s32.totalorder %s2290_s29, 0 }
  0x26   : > { %p221_p6 = scmp.eq.s32.totalorder %s2290_s29, 1  ;;  %p227_p9 = scmp.eq.s32.totalorder %s1725_s11, 1 }
  0x27   : > { %p1726_p10 = scmp.ge.s32.totalorder %s2163_s26, 1  ;;  %p2300_p11 = por %p2587_p5, %p67_p4 }
  0x28   : > { %p2307_p12 = por %p221_p6, %p61_p1  ;;  %p2311_p13 = por %p227_p9, %p67_p4 }
  0x29   : > { %p234_p0 = scmp.lt.s32.totalorder %s2163_s26, 3  ;;  %s2166_s16 = smov [#allocation11]  }
  0x2a   : > { %s2603_s14 = scalar_select %p2311_p13, 1, 0 }
  0x2b   : > { %p2316_p2 = pnand %p1726_p10, %p234_p0  ;;  %s246_s18 = sshll.u32 %s2166_s16, 4  ;;  %s247_s18 = int_to_ptr.vmem [resolvable:$true] %s246_s18 }
  0x2c   : > { %2604 = sst [smem:[#allocation22_spill]] %s2603_s14  ;;  %s267_s30 = scalar_lea.vmem [#allocation5], %s2261_s7 }
  0x2d   : > { %p1859_p3 = pneg %p2316_p2  ;;  %s275_s1 = sshll.u32 %s267_s30, 4  ;;  %s2333_s1 = int_to_ptr.vmem [resolvable:$true] %s275_s1 }
  0x2e   : > { %s2004_s16 = scalar_lea.vmem %s247_s18, 512  ;;  %p2012_p0 = scmp.lt.s32.totalorder %s247_s18, %s247_s18 }
  0x2f   : > { %p2324_p1 = pnand %p1859_p3, %p2587_p5  ;;  %p2005_p6 = scmp.ne.s32.totalorder %s247_s18, %s2004_s16 }
  0x30   : > { %p2013_p3 = scmp.lt.s32.totalorder %s2004_s16, %s2004_s16 }
  0x31   : > { %p1995_p4 = pneg %p2324_p1 }
  0x32   : > { %p2014_p5 = por %p2013_p3, %p2012_p0 }
  0x33   : > { %p2007_p9 = pnand %p2005_p6, %p1995_p4 }
  0x35   : > { %p2008_p10 = pneg %p2007_p9 }
  0x37   : > { %p2015_p8 = pnand %p2014_p5, %p2008_p10 }
  0x39   : > { %2018 = shalt.err (!%p2015_p8)
}
  0x3a   : > { %s2167_s27 = smov 128   ;;  %s2168_s30 = smov 8  }
  0x3b   : > { %1862 = dma.hbm_to_vmem [thread:$0]  (!%p2324_p1), %s2583_s4, 512, %s247_s18, [#allocation12], %s2167_s27, %s2167_s27, %s2168_s30  }
  0x3c   : > { %s2607_s11 = sand.u32 1, %s2151_s23   ;;  %s2032_s10 = scalar_lea.vmem %s2333_s1, 128 }
  0x3d   : > { %s264_s25 = scalar_lea.sflag [#allocation6], %s2607_s11  ;;  %p2033_p4 = scmp.ne.s32.totalorder %s2333_s1, %s2032_s10 }
  0x3e   : > { %p2608_p5 = pneg %p2266_p7  ;;  %s2169_s16 = smov [#allocation5]  }
  0x3f   : > { %s2037_s26 = sshll.u32 %s2169_s16, 4  ;;  %s2038_s26 = int_to_ptr.vmem [resolvable:$false] %s2037_s26 }
  0x40   : > { %p2035_p8 = pnand %p2033_p4, %p2608_p5  ;;  %s2039_s14 = scalar_lea.vmem %s2038_s26, 256 }
  0x41   : > { %p2040_p9 = scmp.lt.s32.totalorder %s2333_s1, %s2038_s26  ;;  %p2041_p10 = scmp.lt.s32.totalorder %s2039_s14, %s2032_s10 }
  0x42   : > { %p2036_p6 = pneg %p2035_p8 }
  0x43   : > { %p2042_p0 = por %p2041_p10, %p2040_p9 }
  0x45   : > { %p2043_p3 = pnand %p2042_p0, %p2036_p6 }
  0x47   : > { %2046 = shalt.err (!%p2043_p3)
}
  0x48   : > { %s2609_s19 = scalar_lea.hbm %s2579_s0, %s2264_s8  ;;  %s311_s26 = scalar_lea.hbm %s2581_s2, %s2264_s8 }
  0x49   : > { %1866 = dma.hbm_to_vmem [thread:$0]  (!%p2266_p7), %s2609_s19, 128, %s2333_s1, %s264_s25  }
  0x4a   : > { %s305_s10 = scalar_lea.vmem [#allocation10], %s2261_s7  ;;  %p2610_p4 = pmov %p2608_p5 }
  0x4b   : > { %s313_s14 = sshll.u32 %s305_s10, 4  ;;  %s2170_s28 = smov [#allocation10]   ;;  %s314_s14 = int_to_ptr.vmem [resolvable:$true] %s313_s14 }
  0x4c   : > { %s2060_s20 = scalar_lea.vmem %s314_s14, 128  ;;  %s2065_s16 = sshll.u32 %s2170_s28, 4  ;;  %s2066_s16 = int_to_ptr.vmem [resolvable:$false] %s2065_s16 }
  0x4d   : > { %p2061_p1 = scmp.ne.s32.totalorder %s314_s14, %s2060_s20  ;;  %s2067_s27 = scalar_lea.vmem %s2066_s16, 256 }
  0x4e   : > { %p2068_p6 = scmp.lt.s32.totalorder %s314_s14, %s2066_s16  ;;  %p2069_p9 = scmp.lt.s32.totalorder %s2067_s27, %s2060_s20 }
  0x4f   : > { %p2063_p5 = pnand %p2061_p1, %p2610_p4 }
  0x50   : > { %p2070_p10 = por %p2069_p9, %p2068_p6 }
  0x51   : > { %p2064_p8 = pneg %p2063_p5 }
  0x53   : > { %p2071_p0 = pnand %p2070_p10, %p2064_p8 }
  0x55   : > { %2074 = shalt.err (!%p2071_p0)
}
  0x56   : > { %1872 = dma.hbm_to_vmem [thread:$0]  (!%p2266_p7), %s311_s26, 128, %s314_s14, %s2279_s17  }
  0x57   : > { %335 = sbr.rel (%p2316_p2) target bundleno = 1570 (0x622), region = 44  ;;  %s2372_s1 = sand.u32 (!%p2316_p2), 1, %s2147_s22  }
  0x58   : > { %s2375_s25 = sshll.u32 (!%p2316_p2), %s2372_s1, 3  ;;  %s338_s7 = scalar_lea.sflag (!%p2316_p2), [#allocation6], %s2372_s1 }
  0x59   : > { %s341_s8 = scalar_lea.vmem (!%p2316_p2), [#allocation5], %s2375_s25 }
  0x5c   : > { %2126 = dma.done.wait (%p2300_p11), %s338_s7, 128  }
  0x5d   : > { %2128 = vsyncadd (%p2300_p11), %s338_s7, 4294967168  ;;  %s346_s9 = sand.u32 1, %s2290_s29   ;;  %s350_s15 = scalar_lea.vmem [#allocation8], %s2375_s25 }
  0x5e   : > { %s347_s17 = scalar_lea.sflag [#allocation9], %s346_s9 }
  0x5f   : > { %2130 = dma.done.wait (%p2300_p11), %s347_s17, 256  }
  0x60   : > { %2132 = vsyncadd (%p2300_p11), %s347_s17, 4294967040  ;;  %s359_s18 = scalar_lea.vmem [#allocation10], %s2375_s25  ;;  %p2611_p7 = scmp.eq.s32.totalorder %s2290_s29, 0 }
  0x62   : > { %2134 = dma.done.wait (%p2611_p7), [#allocation12], 512   ;;  %p2612_p2 = pmov %p2611_p7 }
  0x63   : > { %vm435_vm0 = vcmask 64512   ;;  %v2171_v0 = vmov 0.0   ;;  %vm2172_vm1 = vmmov 0   ;;  %v442_v1 = vld [vmem:[%s350_s15] sm:$0xff]  ;;  %v440_v2 = vld [vmem:[%s341_s8] sm:$0xff]  ;;  %vm426_vm2 = vcmask 7168  }
  0x64   : > { %2136 = vsyncadd (%p2612_p2), [#allocation12], 4294966784  ;;  %1787 = vmatprep.subr.mxu0 %v2171_v0  ;;  %436 = vst.msk [vmem:[#allocation4] sm:$0xff] %vm435_vm0, %v2171_v0  ;;  %1789 = vmatprep.mubr.msk.f32.mxu0 %vm2172_vm1, %v2171_v0  ;;  %v441_v3 = vmul.f32 0.17677669, %v440_v2  ;;  %v2173_v4 = vmov -inf  }
  0x65   : > { %437 = vst.msk [vmem:[#allocation4 + $0x8] sm:$0xff] %vm435_vm0, %v2171_v0  ;;  %438 = vst.msk [vmem:[#allocation4 + $0x10] sm:$0xff] %vm435_vm0, %v2171_v0  ;;  %1792 = vmatprep.subr.mxu1 %v2171_v0  ;;  %1794 = vmatprep.mubr.msk.f32.mxu1 %vm2172_vm1, %v2171_v0  ;;  %p412_p11 = scmp.lt.s32.totalorder %s2155_s24, 1  ;;  %v2174_v12 = vmov 0   ;;  %s2175_s26 = smov 120   ;;  %v2455_v17 = vld [vmem:[%s359_s18] sm:$0xff] }
  0x66   : > { %439 = vst.msk [vmem:[#allocation4 + $0x18] sm:$0xff] %vm435_vm0, %v2171_v0  ;;  %1788 = vmatpush3.xpose.msk.msra.mxu0 %vm435_vm0, %v442_v1  ;;  %1939 = vset.pattern.permute.xlu0 %v2174_v12  ;;  %s2176_s10 = smov 112   ;;  %s2177_s14 = smov 104   ;;  %vm1551_vm4 = vcmask 261120  }
  0x67   : > { %1802 = vmatprep.subr.mxu0 %v2171_v0  ;;  %427 = vst.msk [vmem:[#allocation2] sm:$0xff] %vm426_vm2, %v2173_v4  ;;  %428 = vst.msk [vmem:[#allocation2 + $0x8] sm:$0xff] %vm426_vm2, %v2173_v4  ;;  %s413_s29 = scalar_select %p412_p11, %s2155_s24, 1  ;;  %1940 = vset.pattern.permute.xlu1 %v2174_v12 }
  0x68   : > { %429 = vst.msk [vmem:[#allocation2 + $0x10] sm:$0xff] %vm426_vm2, %v2173_v4  ;;  %430 = vst.msk [vmem:[#allocation2 + $0x18] sm:$0xff] %vm426_vm2, %v2173_v4  ;;  %634 = vrot.lane.b32.xlu1 %v442_v1, %s2175_s26  ;;  %1793 = vmatpush3.msra.mxu1 %v2455_v17  ;;  %s1760_s16 = sshll.u32 %s2155_s24, 7  ;;  %s411_s27 = scalar_lea.vmem [#allocation13], %s2375_s25 }
  0x69   : > { %1790 = vmatmul.mubr.msk.f32.vlgmr.msra.gmra.mxu0 %vm435_vm0, %v441_v3  ;;  %431 = vst.msk [vmem:[#allocation3] sm:$0xff] %vm426_vm2, %v2171_v0  ;;  %432 = vst.msk [vmem:[#allocation3 + $0x8] sm:$0xff] %vm426_vm2, %v2171_v0  ;;  %s1741_s12 = sshll.u32 %s413_s29, 1  ;;  %1797 = vmatprep.subr.mxu1 %v2171_v0  ;;  %s1568_s7 = sshll.u32 %s411_s27, 4  ;;  %s1569_s7 = int_to_ptr.vmem [resolvable:$true] %s1568_s7 }
  0x6a   : > { %1804 = vmatprep.mubr.msk.f32.mxu0 %vm2172_vm1, %v2171_v0  ;;  %433 = vst.msk [vmem:[#allocation3 + $0x10] sm:$0xff] %vm426_vm2, %v2171_v0  ;;  %434 = vst.msk [vmem:[#allocation3 + $0x18] sm:$0xff] %vm426_vm2, %v2171_v0  ;;  %s421_s30 = scalar_lea.vmem %s2582_s3, %s1741_s12  ;;  %s1566_s17 = scalar_lea.hbm %s2585_s6, %s1760_s16 }
  0x6b   : > { %v444_v5 = vld [vmem:[%s421_s30] sm:$0x3]  ;;  %s1554_s15 = scalar_lea.sflag [#allocation7], %s2372_s1  ;;  %s2075_s18 = scalar_lea.vmem %s1569_s7, 128 }
  0x6c   : > { %v445_v6 = vunpack.c.0.s8 %v444_v5  ;;  %632 = vrot.lane.b32.xlu1 %v441_v3, %s2175_s26  ;;  %p2076_p3 = scmp.ne.s32.totalorder %s1569_s7, %s2075_s18  ;;  %s2178_s29 = smov [#allocation13]  }
  0x6d   : > { %s2079_s24 = sshll.u32 %s2178_s29, 4  ;;  %s2080_s24 = int_to_ptr.vmem [resolvable:$false] %s2079_s24 }
  0x6e   : > { %vm2430_vm3 = vcmp.eq.s32.totalorder %v445_v6, 0  ;;  %v2443_v13 = vld [vmem:[#allocation2] sm:$0xff]  ;;  %v712_v42 = vld [vmem:[#allocation2 + $0x8] sm:$0xff]  ;;  %p2077_p1 = pnand %p2076_p3, %p2307_p12  ;;  %s2081_s25 = scalar_lea.vmem %s2080_s24, 256 }
  0x6f   : > { %v904_v45 = vld [vmem:[#allocation2 + $0x10] sm:$0xff]  ;;  %v1095_v49 = vld [vmem:[#allocation2 + $0x18] sm:$0xff]  ;;  %p2082_p5 = scmp.lt.s32.totalorder %s1569_s7, %s2080_s24  ;;  %p2083_p8 = scmp.lt.s32.totalorder %s2081_s25, %s2075_s18 }
  0x70   : > { %826 = vrot.lane.b32.xlu1 %v442_v1, %s2176_s10  ;;  %p2078_p4 = pneg %p2077_p1 }
  0x71   : > { %p2084_p6 = por %p2083_p8, %p2082_p5 }
  0x73   : > { %p2085_p9 = pnand %p2084_p6, %p2078_p4 }
  0x74   : > { %824 = vrot.lane.b32.xlu1 %v441_v3, %s2176_s10 }
  0x78   : > { %1017 = vrot.lane.b32.xlu1 %v442_v1, %s2177_s14 }
  0x7c   : > { %1015 = vrot.lane.b32.xlu1 %v441_v3, %s2177_s14 }
  0xda   : > { %v635_v18 = vpop.permute.xlu1 %634 }
  0xde   : > { %v633_v22 = vpop.permute.xlu1 %632 }
  0xe2   : > { %v827_v23 = vpop.permute.xlu1 %826 }
  0xe6   : > { %v825_v24 = vpop.permute.xlu1 %824 }
  0xea   : > { %v1018_v26 = vpop.permute.xlu1 %1017 }
  0xee   : > { %v1016_v27 = vpop.permute.xlu1 %1015 }
 0x129   : > { %v520_v8 = vpop.f32.mrf.mxu0 }
 0x12a   : > { %v524_v9 = vsel %vm2430_vm3, -1e+20, %v520_v8 }
 0x12b   : > { %v1791_v10 = vpop.f32.mrf.mxu0  ;;  %v526_v11 = vsel %vm435_vm0, %v524_v9, -inf }
 0x12c   : > { %527 = vmax.xlane.f32.xlu0 %v526_v11 }
 0x1b5   : > { %v528_v14 = vpop.xlane.xlu0 %527 }
 0x1b6   : > { %v2446_v15 = vmax.f32 %v2443_v13, %v528_v14 }
 0x1b8   : > { %v530_v16 = vsub.f32 %v2443_v13, %v2446_v15  ;;  %549 = vst.msk [vmem:[#allocation2] sm:$0xff] %vm426_vm2, %v2446_v15  ;;  %535 = vperm.xlu0 %1939, %v2446_v15   ;;  %v541_v13 = vld [vmem:[#allocation3] sm:$0xff] }
 0x233   : > { %v536_v19 = vpop.permute.xlu0 %535 }
 0x234   : > { %v538_v20 = vsub.f32 %v524_v9, %v536_v19  ;;  %v531_v9 = vmul.f32 1.442695, %v530_v16 }
 0x236   : > { %v539_v21 = vmul.f32 1.442695, %v538_v20 }
 0x238   : > { %1941 = vpow2.f32 %v539_v21 }
 0x245   : > { %v1942_v25 = vpop.eup %1941 }
 0x246   : > { %1795 = vmatmul.mubr.msk.f32.vlgmr.msra.gmra.mxu1 %vm435_vm0, %v1942_v25  ;;  %v543_v54 = vsel %vm435_vm0, %v1942_v25, 0.0  ;;  %v729_v25 = vld [vmem:[#allocation3 + $0x8] sm:$0xff] }
 0x247   : > { %1798 = vmatpush3.xpose.msk.msra.mxu1 %vm435_vm0, %v635_v18  ;;  %1799 = vmatprep.mubr.msk.f32.mxu1 %vm2172_vm1, %v2171_v0 }
 0x248   : > { %1807 = vmatprep.subr.mxu1 %v2171_v0 }
 0x24a   : > { %1800 = vmatmul.mubr.msk.f32.vlgmr.msra.gmra.mxu1 %vm435_vm0, %v633_v22 }
 0x24b   : > { %1808 = vmatpush3.xpose.msk.msra.mxu1 %vm435_vm0, %v827_v23  ;;  %1809 = vmatprep.mubr.msk.f32.mxu1 %vm2172_vm1, %v2171_v0  ;;  %v1218_v23 = vld [vmem:[#allocation11] sm:$0xff] }
 0x24c   : > { %1817 = vmatprep.subr.mxu1 %v2171_v0 }
 0x24e   : > { %1810 = vmatmul.mubr.msk.f32.vlgmr.msra.gmra.mxu1 %vm435_vm0, %v825_v24 }
 0x24f   : > { %1818 = vmatpush3.xpose.msk.msra.mxu1 %vm435_vm0, %v1018_v26  ;;  %1819 = vmatprep.mubr.msk.f32.mxu1 %vm2172_vm1, %v2171_v0 }
 0x250   : > { %1827 = vmatprep.subr.mxu1 %v2171_v0 }
 0x252   : > { %1820 = vmatmul.mubr.msk.f32.vlgmr.msra.gmra.mxu1 %vm435_vm0, %v1016_v27 }
 0x253   : > { %1829 = vmatprep.mubr.msk.f32.mxu1 %vm2172_vm1, %v2171_v0 }
 0x306   : > { %v2477_v28 = vpop.f32.mrf.mxu1 }
 0x308   : > { %v1796_v29 = vpop.f32.mrf.mxu1 }
 0x309   : > { %v921_v29 = vld [vmem:[#allocation3 + $0x10] sm:$0xff] }
 0x30a   : > { %v706_v30 = vpop.f32.mrf.mxu1 }
 0x30b   : > { %v710_v31 = vsel %vm2430_vm3, -1e+20, %v706_v30 }
 0x30c   : > { %v1801_v32 = vpop.f32.mrf.mxu1  ;;  %v713_v33 = vsel %vm435_vm0, %v710_v31, -inf }
 0x30d   : > { %714 = vmax.xlane.f32.xlu1 %v713_v33  ;;  %v1112_v33 = vld [vmem:[#allocation3 + $0x18] sm:$0xff] }
 0x30e   : > { %v898_v34 = vpop.f32.mrf.mxu1 }
 0x30f   : > { %v902_v35 = vsel %vm2430_vm3, -1e+20, %v898_v34 }
 0x310   : > { %v1811_v36 = vpop.f32.mrf.mxu1  ;;  %v905_v37 = vsel %vm435_vm0, %v902_v35, -inf }
 0x311   : > { %906 = vmax.xlane.f32.xlu0 %v905_v37 }
 0x312   : > { %v1089_v38 = vpop.f32.mrf.mxu1 }
 0x313   : > { %v1093_v39 = vsel %vm2430_vm3, -1e+20, %v1089_v38  ;;  %v550_v38 = vld [vmem:[#allocation4] sm:$0xff] }
 0x314   : > { %v1821_v40 = vpop.f32.mrf.mxu1  ;;  %v1096_v41 = vsel %vm435_vm0, %v1093_v39, -inf }
 0x315   : > { %1097 = vmax.xlane.f32.xlu1 %v1096_v41 }
 0x396   : > { %v715_v43 = vpop.xlane.xlu1 %714 }
 0x397   : > { %v716_v44 = vmax.f32 %v712_v42, %v715_v43 }
 0x399   : > { %v717_v46 = vsub.f32 %v712_v42, %v716_v44  ;;  %736 = vst.msk [vmem:[#allocation2 + $0x8] sm:$0xff] %vm426_vm2, %v716_v44  ;;  %722 = vperm.xlu1 %1940, %v716_v44  }
 0x39a   : > { %v907_v47 = vpop.xlane.xlu0 %906 }
 0x39b   : > { %v908_v48 = vmax.f32 %v904_v45, %v907_v47  ;;  %v718_v11 = vmul.f32 1.442695, %v717_v46 }
 0x39d   : > { %v909_v50 = vsub.f32 %v904_v45, %v908_v48  ;;  %928 = vst.msk [vmem:[#allocation2 + $0x10] sm:$0xff] %vm426_vm2, %v908_v48  ;;  %914 = vperm.xlu0 %1939, %v908_v48   ;;  %v1228_v45 = vld [vmem:[#allocation11 + $0x8] sm:$0xff] }
 0x39e   : > { %v1098_v51 = vpop.xlane.xlu1 %1097  ;;  %1828 = vmatpush3.msra.mxu1 %v1228_v45 }
 0x39f   : > { %v1099_v52 = vmax.f32 %v1095_v49, %v1098_v51  ;;  %v910_v12 = vmul.f32 1.442695, %v909_v50  ;;  %1837 = vmatprep.subr.mxu1 %v2171_v0 }
 0x3a1   : > { %v1100_v53 = vsub.f32 %v1095_v49, %v1099_v52  ;;  %1119 = vst.msk [vmem:[#allocation2 + $0x18] sm:$0xff] %vm426_vm2, %v1099_v52  ;;  %1105 = vperm.xlu1 %1940, %v1099_v52  }
 0x3a3   : > { %v1101_v14 = vmul.f32 1.442695, %v1100_v53  ;;  %v1468_v53 = vld [vmem:[#allocation11 + $0x18] sm:$0xff] }
 0x3a5   : > { %746 = vrot.lane.b32.xlu1 %v2455_v17, %s2175_s26 }
 0x3a9   : > { %937 = vrot.lane.b32.xlu1 %v2455_v17, %s2176_s10 }
 0x3ad   : > { %1128 = vrot.lane.b32.xlu1 %v2455_v17, %s2177_s14 }
 0x3bc   : > { %544 = vadd.xlane.f32.xlu0 %v543_v54  ;;  %v738_v54 = vld [vmem:[#allocation4 + $0x8] sm:$0xff] }
 0x414   : > { %v723_v55 = vpop.permute.xlu1 %722 }
 0x415   : > { %v725_v56 = vsub.f32 %v710_v31, %v723_v55 }
 0x417   : > { %v726_v57 = vmul.f32 1.442695, %v725_v56  ;;  %v930_v56 = vld [vmem:[#allocation4 + $0x10] sm:$0xff] }
 0x418   : > { %v915_v58 = vpop.permute.xlu0 %914 }
 0x419   : > { %1943 = vpow2.f32 %v726_v57  ;;  %v917_v59 = vsub.f32 %v902_v35, %v915_v58 }
 0x41b   : > { %v918_v60 = vmul.f32 1.442695, %v917_v59 }
 0x41c   : > { %v1106_v61 = vpop.permute.xlu1 %1105 }
 0x41d   : > { %1945 = vpow2.f32 %v918_v60  ;;  %v1108_v62 = vsub.f32 %v1093_v39, %v1106_v61 }
 0x41f   : > { %v1109_v63 = vmul.f32 1.442695, %v1108_v62  ;;  %v1121_v62 = vld [vmem:[#allocation4 + $0x18] sm:$0xff] }
 0x420   : > { %v747_v1 = vpop.permute.xlu1 %746 }
 0x421   : > { %1947 = vpow2.f32 %v1109_v63  ;;  %1803 = vmatpush3.msra.mxu0 %v747_v1 }
 0x422   : > { %1812 = vmatprep.subr.mxu0 %v2171_v0  ;;  %1949 = vpow2.f32 %v531_v9 }
 0x423   : > { %1951 = vpow2.f32 %v718_v11 }
 0x424   : > { %v938_v2 = vpop.permute.xlu1 %937  ;;  %1953 = vpow2.f32 %v910_v12 }
 0x425   : > { %1955 = vpow2.f32 %v1101_v14 }
 0x426   : > { %v1944_v3 = vpop.eup %1943 }
 0x427   : > { %1805 = vmatmul.mubr.msk.f32.vlgmr.msra.gmra.mxu0 %vm435_vm0, %v1944_v3  ;;  %v731_v4 = vsel %vm435_vm0, %v1944_v3, 0.0 }
 0x428   : > { %732 = vadd.xlane.f32.xlu1 %v731_v4  ;;  %1813 = vmatpush3.msra.mxu0 %v938_v2  ;;  %v1129_v5 = vpop.permute.xlu1 %1128 }
 0x429   : > { %1814 = vmatprep.mubr.msk.f32.mxu0 %vm2172_vm1, %v2171_v0  ;;  %1822 = vmatprep.subr.mxu0 %v2171_v0 }
 0x42a   : > { %v1946_v6 = vpop.eup %1945 }
 0x42b   : > { %1815 = vmatmul.mubr.msk.f32.vlgmr.msra.gmra.mxu0 %vm435_vm0, %v1946_v6  ;;  %v923_v7 = vsel %vm435_vm0, %v1946_v6, 0.0 }
 0x42c   : > { %924 = vadd.xlane.f32.xlu0 %v923_v7  ;;  %1823 = vmatpush3.msra.mxu0 %v1129_v5 }
 0x42d   : > { %1824 = vmatprep.mubr.msk.f32.mxu0 %vm2172_vm1, %v2171_v0  ;;  %1832 = vmatprep.subr.mxu0 %v2171_v0 }
 0x42e   : > { %v1948_v8 = vpop.eup %1947 }
 0x42f   : > { %1825 = vmatmul.mubr.msk.f32.vlgmr.msra.gmra.mxu0 %vm435_vm0, %v1948_v8  ;;  %v1114_v10 = vsel %vm435_vm0, %v1948_v8, 0.0  ;;  %v1950_v17 = vpop.eup %1949 }
 0x430   : > { %1115 = vadd.xlane.f32.xlu1 %v1114_v10  ;;  %1834 = vmatprep.mubr.msk.f32.mxu0 %vm2172_vm1, %v2171_v0  ;;  %v1952_v18 = vpop.eup %1951  ;;  %v542_v16 = vmul.f32 %v1950_v17, %v541_v13  ;;  %v1384_v10 = vld [vmem:[#allocation11 + $0x10] sm:$0xff] }
 0x431   : > { %v1954_v15 = vpop.eup %1953  ;;  %1833 = vmatpush3.msra.mxu0 %v1218_v23  ;;  %v730_v26 = vmul.f32 %v1952_v18, %v729_v25  ;;  %v1758_v25 = vld [vmem:[%s2584_s5] ss:$0 sm:$0xff] }
 0x432   : > { %v1956_v19 = vpop.eup %1955  ;;  %1842 = vmatprep.subr.mxu0 %v2171_v0  ;;  %v922_v31 = vmul.f32 %v1954_v15, %v921_v29 }
 0x433   : > { %v1113_v35 = vmul.f32 %v1956_v19, %v1112_v33 }
 0x441   : > { %553 = vperm.xlu1 %1940, %v1950_v17  }
 0x442   : > { %741 = vperm.xlu0 %1939, %v1952_v18  }
 0x445   : > { %v545_v20 = vpop.xlane.xlu0 %544  ;;  %933 = vperm.xlu1 %1940, %v1954_v15  }
 0x446   : > { %v546_v21 = vadd.f32 %v545_v20, %v542_v16  ;;  %1124 = vperm.xlu0 %1939, %v1956_v19  }
 0x448   : > { %548 = vst.msk [vmem:[#allocation3] sm:$0xff] %vm426_vm2, %v546_v21 }
 0x44f   : > { %v1209_v22 = vld [vmem:[#allocation3] sm:$0xff] }
 0x450   : > { %1957 = vrcp.f32 %v1209_v22 }
 0x45d   : > { %v1958_v24 = vpop.eup %1957 }
 0x45e   : > { %1214 = vperm.xlu0 %1939, %v1958_v24  }
 0x4b1   : > { %v733_v27 = vpop.xlane.xlu1 %732 }
 0x4b2   : > { %v734_v30 = vadd.f32 %v733_v27, %v730_v26 }
 0x4b4   : > { %735 = vst.msk [vmem:[#allocation3 + $0x8] sm:$0xff] %vm426_vm2, %v734_v30 }
 0x4b5   : > { %v925_v32 = vpop.xlane.xlu0 %924 }
 0x4b6   : > { %v926_v34 = vadd.f32 %v925_v32, %v922_v31 }
 0x4b8   : > { %927 = vst.msk [vmem:[#allocation3 + $0x10] sm:$0xff] %vm426_vm2, %v926_v34 }
 0x4b9   : > { %v1116_v36 = vpop.xlane.xlu1 %1115 }
 0x4ba   : > { %v1117_v37 = vadd.f32 %v1116_v36, %v1113_v35 }
 0x4bb   : > { %v1219_v39 = vld [vmem:[#allocation3 + $0x8] sm:$0xff] }
 0x4bc   : > { %1118 = vst.msk [vmem:[#allocation3 + $0x18] sm:$0xff] %vm426_vm2, %v1117_v37  ;;  %1959 = vrcp.f32 %v1219_v39 }
 0x4bd   : > { %v554_v40 = vpop.permute.xlu1 %553  ;;  %v742_v48 = vpop.permute.xlu0 %741 }
 0x4be   : > { %v556_v41 = vmul.f32 %v554_v40, %v550_v38  ;;  %v744_v55 = vmul.f32 %v742_v48, %v738_v54 }
 0x4bf   : > { %v1375_v42 = vld [vmem:[#allocation3 + $0x10] sm:$0xff] }
 0x4c0   : > { %v630_v43 = vadd.f32 %v2477_v28, %v556_v41  ;;  %1961 = vrcp.f32 %v1375_v42 }
 0x4c1   : > { %v1125_v50 = vpop.permute.xlu0 %1124  ;;  %v934_v57 = vpop.permute.xlu1 %933 }
 0x4c2   : > { %631 = vst.msk [vmem:[#allocation4] sm:$0xff] %vm435_vm0, %v630_v43  ;;  %v936_v61 = vmul.f32 %v934_v57, %v930_v56  ;;  %v1127_v3 = vmul.f32 %v1125_v50, %v1121_v62 }
 0x4c3   : > { %v1459_v44 = vld [vmem:[#allocation3 + $0x18] sm:$0xff] }
 0x4c4   : > { %1963 = vrcp.f32 %v1459_v44 }
 0x4c9   : > { %v1960_v46 = vpop.eup %1959  ;;  %v1211_v51 = vld [vmem:[#allocation4] sm:$0xff] }
 0x4ca   : > { %1224 = vperm.xlu1 %1940, %v1960_v46  }
 0x4cd   : > { %v1962_v47 = vpop.eup %1961 }
 0x4ce   : > { %1380 = vperm.xlu1 %1940, %v1962_v47  }
 0x4d1   : > { %v1964_v49 = vpop.eup %1963 }
 0x4d2   : > { %1464 = vperm.xlu0 %1939, %v1964_v49  }
 0x4d9   : > { %v1215_v52 = vpop.permute.xlu0 %1214 }
 0x4da   : > { %v1217_v28 = vmul.f32 %v1215_v52, %v1211_v51 }
 0x4dc   : > { %1835 = vmatmul.mubr.msk.f32.vlgmr.msra.gmra.mxu0 %vm435_vm0, %v1217_v28 }
 0x4dd   : > { %1843 = vmatpush3.msra.mxu0 %v1468_v53  ;;  %1844 = vmatprep.mubr.msk.f32.mxu0 %vm2172_vm1, %v2171_v0 }
 0x4e7   : > { %v818_v58 = vpop.f32.mrf.mxu0 }
 0x4e8   : > { %v822_v59 = vadd.f32 %v818_v58, %v744_v55 }
 0x4e9   : > { %v1806_v60 = vpop.f32.mrf.mxu0 }
 0x4ea   : > { %823 = vst.msk [vmem:[#allocation4 + $0x8] sm:$0xff] %vm435_vm0, %v822_v59 }
 0x4eb   : > { %v1009_v63 = vpop.f32.mrf.mxu0 }
 0x4ec   : > { %v1013_v1 = vadd.f32 %v1009_v63, %v936_v61 }
 0x4ed   : > { %v1816_v2 = vpop.f32.mrf.mxu0 }
 0x4ee   : > { %1014 = vst.msk [vmem:[#allocation4 + $0x10] sm:$0xff] %vm435_vm0, %v1013_v1 }
 0x4ef   : > { %v1200_v4 = vpop.f32.mrf.mxu0 }
 0x4f0   : > { %v1204_v5 = vadd.f32 %v1200_v4, %v1127_v3 }
 0x4f1   : > { %v1826_v6 = vpop.f32.mrf.mxu0  ;;  %v1221_v7 = vld [vmem:[#allocation4 + $0x8] sm:$0xff] }
 0x4f2   : > { %1205 = vst.msk [vmem:[#allocation4 + $0x18] sm:$0xff] %vm435_vm0, %v1204_v5 }
 0x4f5   : > { %v1377_v11 = vld [vmem:[#allocation4 + $0x10] sm:$0xff] }
 0x4f9   : > { %v1461_v17 = vld [vmem:[#allocation4 + $0x18] sm:$0xff] }
 0x545   : > { %v1225_v8 = vpop.permute.xlu1 %1224 }
 0x546   : > { %v1227_v9 = vmul.f32 %v1225_v8, %v1221_v7 }
 0x548   : > { %1830 = vmatmul.mubr.msk.f32.vlgmr.msra.gmra.mxu1 %vm435_vm0, %v1227_v9 }
 0x549   : > { %v1381_v12 = vpop.permute.xlu1 %1380  ;;  %1838 = vmatpush3.msra.mxu1 %v1384_v10  ;;  %1839 = vmatprep.mubr.msk.f32.mxu1 %vm2172_vm1, %v2171_v0 }
 0x54a   : > { %v1383_v14 = vmul.f32 %v1381_v12, %v1377_v11 }
 0x54c   : > { %1840 = vmatmul.mubr.msk.f32.vlgmr.msra.gmra.mxu1 %vm435_vm0, %v1383_v14 }
 0x54d   : > { %v1465_v18 = vpop.permute.xlu0 %1464 }
 0x54e   : > { %v1467_v13 = vmul.f32 %v1465_v18, %v1461_v17 }
 0x550   : > { %1845 = vmatmul.mubr.msk.f32.vlgmr.msra.gmra.mxu0 %vm435_vm0, %v1467_v13 }
 0x59c   : > { %v1371_v15 = vpop.f32.mrf.mxu0 }
 0x59e   : > { %v1836_v16 = vpop.f32.mrf.mxu0 }
 0x608   : > { %v1298_v19 = vpop.f32.mrf.mxu1 }
 0x609   : > { %v1372_v22 = vadd.f32 %v1371_v15, %v1298_v19 }
 0x60a   : > { %v1831_v20 = vpop.f32.mrf.mxu1 }
 0x60c   : > { %v1454_v21 = vpop.f32.mrf.mxu1 }
 0x60d   : > { %v1458_v24 = vadd.f32 %v1454_v21, %v1372_v22 }
 0x60e   : > { %v1841_v23 = vpop.f32.mrf.mxu1 }
 0x610   : > { %v1538_v0 = vpop.f32.mrf.mxu0 }
 0x611   : > { %v1542_v26 = vadd.f32 %v1538_v0, %v1458_v24 }
 0x612   : > { %v1846_v27 = vpop.f32.mrf.mxu0 }
 0x613   : > { %v1550_v29 = vadd.f32 %v1758_v25, %v1542_v26 }
 0x615   : > { %1552 = vst.msk [vmem:[%s411_s27] sm:$0xff] %vm1551_vm4, %v1550_v29 }
 0x616   : > { %2088 = shalt.err (!%p2085_p9)
}
 0x617   : > { %s2089_s12 = scalar_lea.hbm %s1566_s17, 128  ;;  %s2093_s11 = scalar_lea.hbm %s2585_s6, 256 }
 0x618   : > { %p2090_p10 = scmp.ne.s32.totalorder %s1566_s17, %s2089_s12  ;;  %p2094_p2 = scmp.lt.s32.totalorder %s1566_s17, %s2585_s6 }
 0x619   : > { %p2095_p11 = scmp.lt.s32.totalorder %s2093_s11, %s2089_s12 }
 0x61a   : > { %p2091_p0 = pnand %p2090_p10, %p2307_p12 }
 0x61b   : > { %p2096_p3 = por %p2095_p11, %p2094_p2 }
 0x61c   : > { %p2092_p7 = pneg %p2091_p0 }
 0x61e   : > { %p2097_p1 = pnand %p2096_p3, %p2092_p7 }
 0x620   : > { %2100 = shalt.err (!%p2097_p1)
}
 0x621   : > { %1857 = dma.vmem_to_hbm [thread:$0]  (%p2307_p12), %s1569_s7, 128, %s1566_s17, %s1554_s15  }
 0x622 PF: > { %s2616_s14 = sld [smem:[#allocation19_spill]]  ;;  %s1580_s20 = sand.u32 1, %s2143_s21  }
 0x623   : > { %s1581_s28 = scalar_lea.sflag [#allocation7], %s1580_s20 }
 0x628   : > { %p2617_p4 = scmp.ge.s32.totalorder %s2616_s14, 2 }
 0x62a   : > { %p1874_p5 = pnand %p2617_p4, %p2311_p13 }
 0x62c   : > { %p1875_p8 = pneg %p1874_p5 }
 0x62e   : > { %2138 = dma.done.wait (%p1875_p8), %s1581_s28, 128  }
 0x62f   : > { %2140 = vsyncadd (%p1875_p8), %s1581_s28, 4294967168  ;;  %s26_s26 = sadd.s32 1, %s2616_s14   ;;  %s2618_s16 = sld [smem:[#allocation21_spill]] }
 0x630   : > { %p23_p6 = scmp.ge.s32.totalorder %s26_s26, 4   ;;  %s2619_s24 = sld [smem:[#allocation18_spill]] }
 0x631   : > { %s2620_s25 = sld [smem:[#allocation20_spill]]  ;;  %s2621_s21 = smov %s2147_s22 }
 0x632   : > { %s2622_s22 = smov %s2151_s23  ;;  %25 = sbr.rel (!%p23_p6) target bundleno = 11 (0xb), region = 137 }
 0x635   : > { %s2623_s23 = smov %s2618_s16 }
 0x637   :  { %1586 = vsyncpa [#allocation6], 1 }
 0x638   :  { %1588 = vsyncpa [#allocation6 + $0x1], 1 }
 0x639   :  { %1589 = vsyncpa [#allocation9], 1 }
 0x63a   :  { %1591 = vsyncpa [#allocation9 + $0x1], 1 }
 0x63b   :  { %1592 = vsyncpa [#allocation12], 1 }
 0x63c   :  { %1593 = vsyncpa [#allocation7], 1 }
 0x63d   :  { %1595 = vsyncpa [#allocation7 + $0x1], 1 }

</bundles_post_ra>
